<compile_context>
chip_gen: v6e
topology: v6e:2x2x1
jax: 0.10.0
libtpu: 0.0.40
codegen_flags: <defaults>
</compile_context>

<pallas_src>
import functools

import jax
import jax.numpy as jnp
from jax.experimental import pallas as pl
from jax.experimental.pallas import tpu as pltpu

_LANE = 128


def _device_kind() -> str:
    try:
        return jax.devices()[0].device_kind.lower()
    except Exception:
        return ""


def _compute_dtype(dtype):
    # Native bf16 compute where the VPU/EUP support it (v6e, v7x); f32 upcast
    # elsewhere (v5e has no bf16 VPU/EUP) and for every other input dtype.
    if dtype == jnp.bfloat16:
        kind = _device_kind()
        if ("v6" in kind) or ("v7" in kind):
            return jnp.bfloat16
    return jnp.float32


def _chip_tuning():
    """Returns (target block bytes, min grid steps, vmem_limit_bytes or None)."""
    kind = _device_kind()
    if "v7" in kind:
        # Two TensorCores + ~3.2 TB/s HBM: bigger blocks amortize the fixed
        # ~0.35 us per-step overhead; aim for >=2 steps per TC.  2 in + 2 out
        # pipeline buffers x 8 MiB = 32 MiB, so raise the scoped-VMEM limit.
        return 8 << 20, 4, 48 << 20
    # v5e / v6e: single TensorCore -- grid steps are a serial loop, so only
    # split enough for DMA/compute overlap.  4 x 2 MiB fits the 16 MiB scoped
    # default with headroom; no explicit vmem limit needed.
    return 2 << 20, 2, None


def _pick_block(total, tile, target, floor, min_steps):
    """Pick a block extent (multiple of `tile`, never above `total`'s full tiles).

    Aims for ~`target` per block; splits into >= `min_steps` grid steps only
    when blocks can stay at or above `floor` (never shrinks blocks out of the
    HBM-roofline sweet spot just to manufacture grid steps).
    """
    if total < tile:
        return total                          # full extent: always legal
    full_tiles = total // tile
    target_tiles = max(1, target // tile)
    floor_tiles = max(1, floor // tile)
    block_tiles = min(target_tiles, full_tiles)
    total_tiles = -(-total // tile)            # ceil: counts a partial tail tile
    if total_tiles >= min_steps * floor_tiles:
        block_tiles = min(block_tiles,
                          max(floor_tiles, -(-total_tiles // min_steps)))
    return block_tiles * tile


def _shifted_sigmoid_kernel(x_ref, o_ref, *, a, b, compute_dtype):
    x = x_ref[...].astype(compute_dtype)
    # sigmoid(x)*scale + shift == (scale/2)*tanh(x/2) + (scale/2 + shift)
    # -> one EUP op per vreg; exact math for any scale/shift.
    y = jnp.tanh(x * 0.5)
    if a != 1.0:
        y = y * a
    if b != 0.0:
        y = y + b
    o_ref[...] = y.astype(o_ref.dtype)


def shifted_sigmoid(x: jax.Array, shift: float = -1.0, scale: float = 2.0) -> jax.Array:
    """Elementwise sigmoid(x) * scale + shift via a Pallas TPU kernel."""
    orig_shape = x.shape
    dtype = x.dtype
    n = x.size

    a = float(scale) * 0.5
    b = float(scale) * 0.5 + float(shift)

    compute_dtype = _compute_dtype(dtype)
    itemsize = jnp.dtype(dtype).itemsize
    pack = max(1, 4 // itemsize)               # 1 for f32, 2 for bf16, 4 for int8
    tile_rows = 8 * pack                       # dtype-aware sublane group
    tile_elems = tile_rows * _LANE

    if n == 0 or (n % _LANE != 0 and n < tile_elems):
        # Tiny / empty input: not worth a kernel launch.
        y = jnp.tanh(x.astype(jnp.float32) * 0.5) * a + b
        return y.astype(dtype)

    target_bytes, min_steps, vmem_limit = _chip_tuning()
    target_elems = max(tile_elems, target_bytes // itemsize)
    floor_elems = max(tile_elems, (1 << 20) // itemsize)   # ~1 MiB block floor

    kernel = functools.partial(
        _shifted_sigmoid_kernel, a=a, b=b, compute_dtype=compute_dtype)

    cp_kwargs = {"dimension_semantics": ("parallel",)}
    if vmem_limit is not None:
        cp_kwargs["vmem_limit_bytes"] = int(vmem_limit)
    compiler_params = pltpu.CompilerParams(**cp_kwargs)

    if n % _LANE == 0:
        # 128-lane-aligned size: free bitcast view to (rows, 128); tile along
        # the sublane axis with a cdiv grid (partial last block masked).
        rows = n // _LANE
        block_rows = _pick_block(rows, tile_rows, target_elems // _LANE,
                                 floor_elems // _LANE, min_steps)
        out = pl.pallas_call(
            kernel,
            out_shape=jax.ShapeDtypeStruct((rows, _LANE), dtype),
            grid_spec=pltpu.PrefetchScalarGridSpec(
                num_scalar_prefetch=0,
                grid=(pl.cdiv(rows, block_rows),),
                in_specs=[pl.BlockSpec((block_rows, _LANE), lambda i: (i, 0))],
                out_specs=pl.BlockSpec((block_rows, _LANE), lambda i: (i, 0)),
            ),
            compiler_params=compiler_params,
        )(x.reshape(rows, _LANE))
    else:
        # Unaligned size: run directly on the flat 1-D view with a
        # 128-multiple block; Pallas masks the partial last block.  No
        # host-side slice / pad / concat (each would add a full-tensor HBM
        # pass around the kernel).
        block_elems = _pick_block(n, tile_elems, target_elems, floor_elems,
                                  min_steps)
        out = pl.pallas_call(
            kernel,
            out_shape=jax.ShapeDtypeStruct((n,), dtype),
            grid_spec=pltpu.PrefetchScalarGridSpec(
                num_scalar_prefetch=0,
                grid=(pl.cdiv(n, block_elems),),
                in_specs=[pl.BlockSpec((block_elems,), lambda i: (i,))],
                out_specs=pl.BlockSpec((block_elems,), lambda i: (i,)),
            ),
            compiler_params=compiler_params,
        )(x.reshape(-1))

    return out.reshape(orig_shape)


if __name__ == "__main__":
    # Small NCHW input consistent with conv-style activation usage.
    key = jax.random.PRNGKey(0)
    x = jax.random.normal(key, (2, 4, 16, 16), dtype=jnp.float32)

    y = jax.block_until_ready(shifted_sigmoid(x))          # default shift=-1, scale=2
    y_ref = jax.nn.sigmoid(x) * 2.0 - 1.0
    assert y.shape == x.shape and y.dtype == x.dtype
    assert jnp.allclose(y, y_ref, atol=1e-5, rtol=1e-5)

    # Non-default scale/shift + size not a multiple of 128 -> 1-D masked path.
    x2 = jax.random.normal(jax.random.PRNGKey(0), (5, 300), dtype=jnp.float32)
    y2 = jax.block_until_ready(shifted_sigmoid(x2, shift=0.5, scale=3.0))
    y2_ref = jax.nn.sigmoid(x2) * 3.0 + 0.5
    assert jnp.allclose(y2, y2_ref, atol=1e-5, rtol=1e-5)

    # bf16 input (native bf16 compute on v6e/v7x, f32 upcast elsewhere).
    x3 = jax.random.normal(jax.random.PRNGKey(1), (4, 8, 128), dtype=jnp.bfloat16)
    y3 = jax.block_until_ready(shifted_sigmoid(x3))
    y3_ref = jax.nn.sigmoid(x3.astype(jnp.float32)) * 2.0 - 1.0
    assert y3.shape == x3.shape and y3.dtype == jnp.bfloat16
    assert jnp.allclose(y3.astype(jnp.float32), y3_ref, atol=2e-2, rtol=2e-2)

    # Tiny unaligned input -> plain-jnp fallback (no kernel launch).
    x4 = jax.random.normal(jax.random.PRNGKey(2), (3, 5, 7), dtype=jnp.float32)
    y4 = jax.block_until_ready(shifted_sigmoid(x4, shift=-0.25, scale=1.5))
    y4_ref = jax.nn.sigmoid(x4) * 1.5 - 0.25
    assert jnp.allclose(y4, y4_ref, atol=1e-5, rtol=1e-5)

    print("KERNEL_OK")
</pallas_src>

<mosaic_0001>
module attributes {stable_mosaic.version = 11 : i64} {
  func.func @_shifted_sigmoid_kernel(%arg0: i32, %arg1: memref<16x128xf32, #tpu.memory_space<vmem>>, %arg2: memref<16x128xf32, #tpu.memory_space<vmem>>) attributes {dimension_semantics = [#tpu.dimension_semantics<parallel>], iteration_bounds = array<i64: 1>, scalar_prefetch = 0 : i64, scratch_operands = 0 : i64, tpu.core_type = #tpu.core_type<tc>, window_params = [{transform_indices = @transform_0, window_bounds = array<i64: 16, 128>}, {transform_indices = @transform_1, window_bounds = array<i64: 16, 128>}]} {
    %c0 = arith.constant 0 : index
    %c0_0 = arith.constant 0 : index
    %0 = vector.load %arg1[%c0, %c0_0] : memref<16x128xf32, #tpu.memory_space<vmem>>, vector<16x128xf32>
    %cst = arith.constant 5.000000e-01 : f32
    %1 = vector.broadcast %cst : f32 to vector<16x128xf32>
    %2 = arith.mulf %0, %1 : vector<16x128xf32>
    %3 = math.tanh %2 : vector<16x128xf32>
    %c0_1 = arith.constant 0 : index
    %c0_2 = arith.constant 0 : index
    %4 = vector.load %arg2[%c0_1, %c0_2] : memref<16x128xf32, #tpu.memory_space<vmem>>, vector<16x128xf32>
    tpu.vector_store %arg2[%c0_1, %c0_2], %3 {strides = array<i32>} : memref<16x128xf32, #tpu.memory_space<vmem>>, vector<16x128xf32>,
    return
  }
  func.func @transform_0(%arg0: i32) -> (i32, i32) {
    %c0_i32 = arith.constant 0 : i32
    %c0_i32_0 = arith.constant 0 : i32
    return %arg0, %c0_i32 : i32, i32
  }
  func.func @transform_1(%arg0: i32) -> (i32, i32) {
    %c0_i32 = arith.constant 0 : i32
    %c0_i32_0 = arith.constant 0 : i32
    return %arg0, %c0_i32 : i32, i32
  }
}

</mosaic_0001>

<bundles_post_ra>
// kernel: tpu_custom_call.1
= control target key start
LH: loop header
LB: loop body
LE: loop exit
PB: predicated region body
PF: predicated region fallthrough
CT: control target
= control target key end

     0   :  { %6 = vsyncpa [#allocation3], 0  ;;  %s120_s0 = inlined_call_operand.hbm [shape: f32[16,128], index: 0, kind: input, shape index: {}]   ;;  %s121_s1 = inlined_call_operand.hbm [shape: f32[16,128], index: 1, kind: output, shape index: {}]  }
   0x1   :  { %7 = vsyncpa [#allocation4], 0  ;;  %s100_s6 = smov [#allocation2]  }
   0x2   :  { %s13_s7 = sshll.u32 %s100_s6, 4  ;;  %s14_s7 = int_to_ptr.vmem [resolvable:$true] %s13_s7 }
   0x3   :  { %s64_s8 = scalar_lea.vmem %s14_s7, 256  ;;  %p69_p1 = scmp.lt.s32.totalorder %s14_s7, %s14_s7 }
   0x4   :  { %p65_p0 = scmp.ne.s32.totalorder %s14_s7, %s64_s8  ;;  %p70_p2 = scmp.lt.s32.totalorder %s64_s8, %s64_s8 }
   0x6   :  { %p71_p3 = por %p70_p2, %p69_p1 }
   0x8   :  { %p72_p4 = pnand %p71_p3, %p65_p0 }
   0xa   :  { %75 = shalt.err (!%p72_p4)
}
   0xb   :  { %s101_s9 = smov 128   ;;  %s102_s10 = smov 8  }
   0xc   :  { %19 = dma.hbm_to_vmem [thread:$0]  %s120_s0, 256, %s14_s7, [#allocation3], %s101_s9, %s101_s9, %s102_s10  }
   0xd   :  { %96 = dma.done.wait [#allocation3], 256  }
   0xe   :  { %97 = vsyncadd [#allocation3], 4294967040  ;;  %v23_v0 = vld [vmem:[#allocation2] sm:$0xff]  ;;  %v24_v1 = vld [vmem:[#allocation2 + $0x8] sm:$0xff]  ;;  %s103_s13 = smov [#allocation5]  }
   0xf   :  { %v25_v2 = vmul.f32 0.5, %v23_v0  ;;  %v26_v3 = vmul.f32 0.5, %v24_v1  ;;  %s36_s14 = sshll.u32 %s103_s13, 4  ;;  %s37_s14 = int_to_ptr.vmem [resolvable:$true] %s36_s14 }
  0x10   :  { %s76_s15 = scalar_lea.vmem %s37_s14, 256  ;;  %p81_p6 = scmp.lt.s32.totalorder %s37_s14, %s37_s14 }
  0x11   :  { %52 = vtanh.f32 %v25_v2  ;;  %p77_p5 = scmp.ne.s32.totalorder %s37_s14, %s76_s15  ;;  %p82_p7 = scmp.lt.s32.totalorder %s76_s15, %s76_s15 }
  0x12   :  { %54 = vtanh.f32 %v26_v3 }
  0x13   :  { %p83_p8 = por %p82_p7, %p81_p6 }
  0x15   :  { %p84_p9 = pnand %p83_p8, %p77_p5 }
  0x1e   :  { %v53_v4 = vpop.eup %52 }
  0x1f   :  { %v55_v5 = vpop.eup %54  ;;  %29 = vst [vmem:[#allocation5] sm:$0xff] %v53_v4 }
  0x20   :  { %30 = vst [vmem:[#allocation5 + $0x8] sm:$0xff] %v55_v5 }
  0x21   :  { %87 = shalt.err (!%p84_p9)
}
  0x22   :  { %42 = dma.vmem_to_hbm [thread:$0]  %s37_s14, 256, %s121_s1, [#allocation4], %s101_s9, %s101_s9, %s102_s10  }
  0x23   :  { %98 = dma.done.wait [#allocation4], 256  }
  0x24   :  { %99 = vsyncadd [#allocation4], 4294967040 }
  0x25   :  { %46 = vsyncpa [#allocation3], 1 }
  0x26   :  { %47 = vsyncpa [#allocation4], 1 }

</bundles_post_ra>
